<compile_context>
chip_gen: v7x
topology: tpu7x:2x2x1
jax: 0.10.0
libtpu: 0.0.40
codegen_flags: <defaults>
</compile_context>

<pallas_src>
import functools

import jax
import jax.numpy as jnp
from jax.experimental import pallas as pl
from jax.experimental.pallas import tpu as pltpu

_LANE = 128


def _cdiv(a, b):
    return -(-a // b)


def _round_up(a, b):
    return _cdiv(a, b) * b


def _plan_tiling(bt, d, x_itemsize, tile_groups=None):
    """Pick (tg, grid_n, vmem_limit).  One group = 128 tokens; tile = tg*128 rows."""
    n_groups = _cdiv(bt, _LANE)
    try:
        vmem_cap = int(pltpu.get_tpu_info().vmem_capacity_bytes)
    except Exception:
        vmem_cap = 0
    if vmem_cap >= 96 * 2**20:
        # v5e / v6e: 128 MiB VMEM, one TensorCore -> large tiles, high limit.
        budget, max_groups, vmem_limit, split_two = 16 * 2**20, 64, 64 * 2**20, False
    else:
        # v7x (64 MiB, 2 TCs) or unknown: small tiles, keep both cores busy.
        budget, max_groups, vmem_limit, split_two = 4 * 2**20, 16, 40 * 2**20, True

    lane_d = _round_up(max(d, 1), _LANE)              # VMEM lane padding when D < 128
    groups_budget = max(1, budget // (_LANE * lane_d * x_itemsize))
    tg = min(max_groups, groups_budget, n_groups)
    if split_two and n_groups >= 2:
        tg = min(tg, _cdiv(n_groups, 2))              # grid_n >= 2 so both v7x cores get work
    if tile_groups is not None:
        tg = min(int(tile_groups), n_groups)
    if tg < n_groups:
        tg = max(8, (tg // 8) * 8)                    # multi-step: 8-aligned sublane blocks
        tg = min(tg, n_groups)
    grid_n = _cdiv(n_groups, tg)
    return tg, grid_n, vmem_limit


def _make_gate_kernel(tg):
    def kernel(x_ref, wb_ref, b_ref, mask_ref, out_ref):
        # x_ref    : [tg*128, D]  VMEM  (tokens in sublanes, features in lanes)
        # wb_ref   : [D, 128]     VMEM  (weight column replicated across lanes)
        # b_ref    : [1, 1]       SMEM  (scalar bias)
        # mask_ref : [tg, 128]    VMEM  (lane-dense token mask)
        # out_ref  : [tg, 128]    VMEM  (lane-dense logits)
        rows = jax.lax.broadcasted_iota(jnp.int32, (_LANE, _LANE), 0)
        cols = jax.lax.broadcasted_iota(jnp.int32, (_LANE, _LANE), 1)
        eye = (rows == cols).astype(jnp.float32)      # diag selector, built in-kernel (no operand)
        wb = wb_ref[...]
        bias = b_ref[0, 0]
        # Static unroll over 128-row groups keeps live intermediates to ~3 x 16 vregs.
        for g in range(tg):
            xg = x_ref[g * _LANE:(g + 1) * _LANE, :]                      # [128, D] static view
            # MXU: p replicated across lanes -> pg[r, l] = sum_d xg[r, d] * w[d]
            pg = jnp.dot(xg, wb, preferred_element_type=jnp.float32)      # [128, 128]
            # Diagonal pick = eye-multiply (VPU) + sublane reduce (XLU): row[l] = p[g*128 + l]
            row = jnp.sum(pg * eye, axis=0, keepdims=True)                # [1, 128] lane-dense
            out_ref[g:g + 1, :] = (row + bias) * mask_ref[g:g + 1, :]
    return kernel


@functools.partial(jax.jit, static_argnames=("tile_groups",))
def relaxed_bernoulli_gate_logits(x, mask, weight, bias, tile_groups=None):
    """Masked gate logits: (x @ weight + bias) * mask, returned as [B, T, 1] f32."""
    B, T, D = x.shape
    BT = B * T
    n_groups = _cdiv(BT, _LANE)
    esize = jnp.dtype(x.dtype).itemsize

    # x: native dtype, no padding copy (ragged tail handled by partial blocks).
    x2 = x.reshape(BT, D)
    # Lane-broadcast weight so the matvec output is already replicated over lanes.
    wb = jnp.broadcast_to(weight.reshape(D, 1).astype(x.dtype), (D, _LANE))
    b2 = bias.reshape(1, 1).astype(jnp.float32)
    m1 = mask.reshape(BT).astype(jnp.float32)
    mpad = n_groups * _LANE - BT
    if mpad:
        m1 = jnp.pad(m1, (0, mpad))                    # cheap: mask only, never x
    m2 = m1.reshape(n_groups, _LANE)                   # lane-dense mask layout

    tg, grid_n, vmem_limit = _plan_tiling(BT, D, esize, tile_groups)
    tile = tg * _LANE

    flops = 2 * grid_n * tile * _LANE * D + 4 * grid_n * tile * _LANE
    bytes_accessed = (BT * D * esize            # x stream (HBM)
                      + D * _LANE * esize       # broadcast weight
                      + 2 * n_groups * _LANE * 4  # mask + output
                      + 4)                      # bias

    out2 = pl.pallas_call(
        _make_gate_kernel(tg),
        out_shape=jax.ShapeDtypeStruct((n_groups, _LANE), jnp.float32),
        grid=(grid_n,),
        in_specs=[
            pl.BlockSpec((tile, D), lambda i: (i, 0)),               # x tiles (pipelined)
            pl.BlockSpec((D, _LANE), lambda i: (0, 0)),              # weight (grid-invariant)
            pl.BlockSpec(memory_space=pltpu.MemorySpace.SMEM),       # scalar bias
            pl.BlockSpec((tg, _LANE), lambda i: (i, 0)),             # lane-dense mask
        ],
        out_specs=pl.BlockSpec((tg, _LANE), lambda i: (i, 0)),       # lane-dense logits
        compiler_params=pltpu.CompilerParams(
            dimension_semantics=("parallel",),
            vmem_limit_bytes=vmem_limit,
        ),
        cost_estimate=pl.CostEstimate(
            flops=flops, transcendentals=0, bytes_accessed=bytes_accessed),
    )(x2, wb, b2, m2)

    return out2.reshape(n_groups * _LANE)[:BT].reshape(B, T, 1)


class RelaxedBernoulliGatePallas:
    """JAX/Pallas port of rationalizers.modules.gates.RelaxedBernoulliGate."""

    def __init__(self, in_features, out_features=1, temperature=1.0, seed=0):
        assert out_features == 1, "module squeezes the last dim; out_features must be 1"
        key = jax.random.PRNGKey(seed)
        kw, kb = jax.random.split(key)
        bound = 1.0 / (in_features ** 0.5)   # PyTorch nn.Linear default init range
        # Stored as [D, out_features] so the kernel does x @ W directly.
        self.weight = jax.random.uniform(
            kw, (in_features, out_features), jnp.float32, -bound, bound)
        self.bias = jax.random.uniform(
            kb, (out_features,), jnp.float32, -bound, bound)
        self.temperature = jnp.asarray([temperature], dtype=jnp.float32)

    def __call__(self, x, mask, tile_groups=None):
        logits = relaxed_bernoulli_gate_logits(
            x, mask, self.weight, self.bias, tile_groups=tile_groups)
        # TODO(synk): torch.distributions.RelaxedBernoulli has no Pallas
        # equivalent; return its parameterization (logits, temperature) instead.
        return {"logits": logits, "temperature": self.temperature}


def _reference_logits(x, mask, weight, bias):
    B, T, D = x.shape
    ref = (x.reshape(B * T, D).astype(jnp.float32) @ weight + bias).reshape(B, T)
    return (ref * mask)[..., None]


if __name__ == "__main__":
    D = 32
    gate = RelaxedBernoulliGatePallas(in_features=D, out_features=1, temperature=1.0)

    key = jax.random.PRNGKey(0)
    kx, km, kx2, km2 = jax.random.split(key, 4)

    # Small demo shape consistent with the module's [B, T, D] inputs.
    B, T = 2, 8
    x = jax.random.normal(kx, (B, T, D), dtype=jnp.float32)
    mask = (jax.random.uniform(km, (B, T)) > 0.25).astype(jnp.float32)

    dist = gate(x, mask)
    logits = jax.block_until_ready(dist["logits"])
    ref = _reference_logits(x, mask, gate.weight, gate.bias)
    assert logits.shape == (B, T, 1)
    assert jnp.allclose(logits, ref, atol=1e-4, rtol=1e-4), "mismatch (small)"

    # Ragged, multi-tile path: BT = 4200 tokens, forced tile of 8 groups ->
    # 5 grid steps with partial (clamped) last blocks on x, mask and out.
    B2, T2 = 2, 2100
    x2 = jax.random.normal(kx2, (B2, T2, D), dtype=jnp.float32)
    mask2 = (jax.random.uniform(km2, (B2, T2)) > 0.25).astype(jnp.float32)
    logits2 = jax.block_until_ready(gate(x2, mask2, tile_groups=8)["logits"])
    ref2 = _reference_logits(x2, mask2, gate.weight, gate.bias)
    assert logits2.shape == (B2, T2, 1)
    assert jnp.allclose(logits2, ref2, atol=1e-4, rtol=1e-4), "mismatch (tiled)"

    print("KERNEL_OK")
</pallas_src>

<mosaic_0001>
module attributes {stable_mosaic.version = 11 : i64} {
  func.func @kernel(%arg0: i32, %arg1: memref<128x32xf32, #tpu.memory_space<vmem>>, %arg2: memref<32x128xf32, #tpu.memory_space<vmem>>, %arg3: memref<1x1xf32, #tpu.memory_space<smem>>, %arg4: memref<1x128xf32, #tpu.memory_space<vmem>>, %arg5: memref<1x128xf32, #tpu.memory_space<vmem>>) attributes {dimension_semantics = [#tpu.dimension_semantics<parallel>], iteration_bounds = array<i64: 1>, scalar_prefetch = 0 : i64, scratch_operands = 0 : i64, tpu.core_type = #tpu.core_type<tc>, window_params = [{transform_indices = @transform_0, window_bounds = array<i64: 128, 32>}, {pipeline_mode = #tpu.pipeline_mode<synchronous>, transform_indices = @transform_1, window_bounds = array<i64: 32, 128>}, {transform_indices = @transform_2, window_bounds = array<i64: 1, 1>}, {transform_indices = @transform_3, window_bounds = array<i64: 1, 128>}, {transform_indices = @transform_4, window_bounds = array<i64: 1, 128>}]} {
    %0 = tpu.iota {dimensions = array<i32: 0>} : vector<128x128xi32>
    %1 = tpu.iota {dimensions = array<i32: 1>} : vector<128x128xi32>
    %2 = arith.cmpi eq, %0, %1 : vector<128x128xi32>
    %3 = arith.extui %2 : vector<128x128xi1> to vector<128x128xi32>
    %4 = arith.sitofp %3 : vector<128x128xi32> to vector<128x128xf32>
    %c0 = arith.constant 0 : index
    %c0_0 = arith.constant 0 : index
    %5 = vector.load %arg2[%c0, %c0_0] : memref<32x128xf32, #tpu.memory_space<vmem>>, vector<32x128xf32>
    %c0_1 = arith.constant 0 : index
    %c0_2 = arith.constant 0 : index
    %6 = memref.load %arg3[%c0_1, %c0_2] : memref<1x1xf32, #tpu.memory_space<smem>>
    %c0_3 = arith.constant 0 : index
    %c0_4 = arith.constant 0 : index
    %7 = vector.load %arg1[%c0_3, %c0_4] : memref<128x32xf32, #tpu.memory_space<vmem>>, vector<128x32xf32>
    %cst = arith.constant dense<0.000000e+00> : vector<128x128xf32>
    %8 = tpu.matmul %7, %5, %cst {dimension_numbers = #tpu.dot_dimension_numbers<[1], [0], [0], [1], [0, 0, 1, 1], [], []>} : vector<128x32xf32>, vector<32x128xf32>, vector<128x128xf32> -> vector<128x128xf32>
    %9 = arith.mulf %8, %4 : vector<128x128xf32>
    %cst_5 = arith.constant dense<0.000000e+00> : vector<128xf32>
    %10 = vector.multi_reduction <add>, %9, %cst_5 [0] : vector<128x128xf32> to vector<128xf32>
    %11 = vector.shape_cast %10 : vector<128xf32> to vector<1x128xf32>
    %12 = vector.broadcast %6 : f32 to vector<1x128xf32>
    %13 = arith.addf %11, %12 : vector<1x128xf32>
    %c0_6 = arith.constant 0 : index
    %c0_7 = arith.constant 0 : index
    %14 = vector.load %arg4[%c0_6, %c0_7] : memref<1x128xf32, #tpu.memory_space<vmem>>, vector<1x128xf32>
    %15 = arith.mulf %13, %14 : vector<1x128xf32>
    %c0_8 = arith.constant 0 : index
    %c0_9 = arith.constant 0 : index
    %16 = vector.load %arg5[%c0_8, %c0_9] : memref<1x128xf32, #tpu.memory_space<vmem>>, vector<1x128xf32>
    tpu.vector_store %arg5[%c0_8, %c0_9], %15 {strides = array<i32>} : memref<1x128xf32, #tpu.memory_space<vmem>>, vector<1x128xf32>,
    return
  }
  func.func @transform_0(%arg0: i32) -> (i32, i32) {
    %c0_i32 = arith.constant 0 : i32
    %c0_i32_0 = arith.constant 0 : i32
    return %arg0, %c0_i32 : i32, i32
  }
  func.func @transform_1(%arg0: i32) -> (i32, i32) {
    %c0_i32 = arith.constant 0 : i32
    %c0_i32_0 = arith.constant 0 : i32
    %c0_i32_1 = arith.constant 0 : i32
    return %c0_i32, %c0_i32_0 : i32, i32
  }
  func.func @transform_2(%arg0: i32) -> (i32, i32) {
    %c0_i32 = arith.constant 0 : i32
    %c0_i32_0 = arith.constant 0 : i32
    %c0_i32_1 = arith.constant 0 : i32
    return %c0_i32, %c0_i32_0 : i32, i32
  }
  func.func @transform_3(%arg0: i32) -> (i32, i32) {
    %c0_i32 = arith.constant 0 : i32
    %c0_i32_0 = arith.constant 0 : i32
    return %arg0, %c0_i32 : i32, i32
  }
  func.func @transform_4(%arg0: i32) -> (i32, i32) {
    %c0_i32 = arith.constant 0 : i32
    %c0_i32_0 = arith.constant 0 : i32
    return %arg0, %c0_i32 : i32, i32
  }
}

</mosaic_0001>

<bundles_post_ra>
// kernel: relaxed_bernoulli_gate_logits.1
= control target key start
LH: loop header
LB: loop body
LE: loop exit
PB: predicated region body
PF: predicated region fallthrough
CT: control target
= control target key end

     0   :  { %vm106_vm0 = vcmask 261120   ;;  %v18_v22 = vlaneseq  ;;  %v443_v27 = vmov 0.0   ;;  %s606_s1 = inlined_call_operand.vmem [shape: f32[32,128], index: 1, kind: input, shape index: {}]   ;;  %s607_s0 = inlined_call_operand.vmem [shape: f32[16,32], index: 0, kind: input, shape index: {}]   ;;  %s608_s2 = inlined_call_operand.<no memory space> [shape: f32[1,1], index: 2, kind: input, shape index: {}]   ;;  %s609_s3 = inlined_call_operand.vmem [shape: f32[1,128], index: 3, kind: input, shape index: {}]   ;;  %s610_s4 = inlined_call_operand.vmem [shape: f32[1,128], index: 4, kind: output, shape index: {}]  }
   0x1   :  { %v85_v0 = vld [vmem:[%s606_s1] sm:$0xff]  ;;  %v86_v1 = vld [vmem:[%s606_s1 + $0x8] sm:$0xff]  ;;  %v87_v2 = vld [vmem:[%s606_s1 + $0x10] sm:$0xff] }
   0x2   :  { %v430_v3 = vpack.c.bf16 %v86_v1, %v85_v0  ;;  %v88_v4 = vld [vmem:[%s606_s1 + $0x18] sm:$0xff]  ;;  %v90_v5 = vld [vmem:[%s607_s0] sm:$0xff]  ;;  %v91_v8 = vld [vmem:[%s607_s0 + $0x8] sm:$0xff]  ;;  %v545_v23 = vshrl.u32 %v18_v22, 7  ;;  %v548_v25 = vand.u32 127, %v18_v22 }
   0x3   :  { %v434_v6 = vpack.c.bf16 %v88_v4, %v87_v2  ;;  %406 = vmatprep.mubr.msk.f32.mxu0 %vm106_vm0, %v90_v5  ;;  %v98_v7 = vld [vmem:[%s607_s0 + $0x40] sm:$0xff]  ;;  %v99_v9 = vld [vmem:[%s607_s0 + $0x48] sm:$0xff]  ;;  %v92_v10 = vld [vmem:[%s607_s0 + $0x10] sm:$0xff] }
   0x4   :  { %431 = vmatprep.subr.bf16.mxu0 %v430_v3  ;;  %438 = vmatprep.subr.bf16.mxu1 %v430_v3  ;;  %v100_v11 = vld [vmem:[%s607_s0 + $0x50] sm:$0xff]  ;;  %v93_v12 = vld [vmem:[%s607_s0 + $0x18] sm:$0xff]  ;;  %v94_v14 = vld [vmem:[%s607_s0 + $0x20] sm:$0xff]  ;;  %v20_v24 = vadd.s32 8, %v545_v23  ;;  %vm37_vm2 = vcmp.eq.s32.totalorder %v545_v23, %v548_v25  ;;  %v21_v26 = vadd.s32 16, %v545_v23  ;;  %v22_v29 = vadd.s32 24, %v545_v23 }
   0x5   :  { %433 = vmatpush3.bf16.msra.mxu0 %v430_v3  ;;  %440 = vmatpush3.bf16.msra.mxu1 %v430_v3  ;;  %v101_v13 = vld [vmem:[%s607_s0 + $0x58] sm:$0xff]  ;;  %v102_v15 = vld [vmem:[%s607_s0 + $0x60] sm:$0xff]  ;;  %v95_v16 = vld [vmem:[%s607_s0 + $0x28] sm:$0xff]  ;;  %v346_v30 = vsel %vm37_vm2, 1.0, %v443_v27  ;;  %v23_v32 = vadd.s32 32, %v545_v23  ;;  %v24_v38 = vadd.s32 40, %v545_v23 }
   0x6   :  { %435 = vmatprep.subr.bf16.mxu0 %v434_v6  ;;  %439 = vmatprep.subr.bf16.mxu1 %v434_v6  ;;  %v103_v17 = vld [vmem:[%s607_s0 + $0x68] sm:$0xff]  ;;  %v96_v18 = vld [vmem:[%s607_s0 + $0x30] sm:$0xff]  ;;  %v97_v20 = vld [vmem:[%s607_s0 + $0x38] sm:$0xff]  ;;  %vm38_vm1 = vcmp.eq.s32.totalorder %v20_v24, %v548_v25  ;;  %vm39_vm3 = vcmp.eq.s32.totalorder %v21_v26, %v548_v25  ;;  %vm40_vm4 = vcmp.eq.s32.totalorder %v22_v29, %v548_v25  ;;  %v25_v42 = vadd.s32 48, %v545_v23 }
   0x7   :  { %418 = vmatprep.mubr.msk.f32.mxu1 %vm106_vm0, %v98_v7  ;;  %v104_v19 = vld [vmem:[%s607_s0 + $0x70] sm:$0xff]  ;;  %v105_v21 = vld [vmem:[%s607_s0 + $0x78] sm:$0xff]  ;;  %v347_v28 = vsel %vm38_vm1, 1.0, %v443_v27  ;;  %v348_v39 = vsel %vm39_vm3, 1.0, %v443_v27  ;;  %vm41_vm5 = vcmp.eq.s32.totalorder %v23_v32, %v548_v25  ;;  %v349_v44 = vsel %vm40_vm4, 1.0, %v443_v27 }
   0x8   :  { %v26_v46 = vadd.s32 56, %v545_v23  ;;  %vm42_vm6 = vcmp.eq.s32.totalorder %v24_v38, %v548_v25  ;;  %v27_v49 = vadd.s32 64, %v545_v23  ;;  %v350_v50 = vsel %vm41_vm5, 1.0, %v443_v27 }
   0x9   :  { %437 = vmatpush3.bf16.msra.mxu0 %v434_v6  ;;  %441 = vmatpush3.bf16.msra.mxu1 %v434_v6  ;;  %vm43_vm7 = vcmp.eq.s32.totalorder %v25_v42, %v548_v25  ;;  %v351_v55 = vsel %vm42_vm6, 1.0, %v443_v27  ;;  %v28_v57 = vadd.s32 72, %v545_v23  ;;  %v29_v61 = vadd.s32 80, %v545_v23 }
   0xa   :  { %vm44_vm8 = vcmp.eq.s32.totalorder %v26_v46, %v548_v25  ;;  %vm45_vm9 = vcmp.eq.s32.totalorder %v27_v49, %v548_v25  ;;  %v352_v62 = vsel %vm43_vm7, 1.0, %v443_v27  ;;  %v30_v6 = vadd.s32 88, %v545_v23 }
   0xb   :  { %v353_v3 = vsel %vm44_vm8, 1.0, %v443_v27  ;;  %vm46_vm10 = vcmp.eq.s32.totalorder %v28_v57, %v548_v25  ;;  %v354_v5 = vsel %vm45_vm9, 1.0, %v443_v27  ;;  %vm47_vm11 = vcmp.eq.s32.totalorder %v29_v61, %v548_v25 }
   0xc   :  { %407 = vmatmul.mubr.msk.f32.vlgmr.msra.gmra.mrb[0].mxu0 %vm106_vm0, %v91_v8  ;;  %419 = vmatmul.mubr.msk.f32.vlgmr.msra.gmra.mrb[0].mxu1 %vm106_vm0, %v99_v9  ;;  %vm48_vm12 = vcmp.eq.s32.totalorder %v30_v6, %v548_v25 }
   0xd   :  { %409 = vmatprep.mubr.msk.f32.mxu0 %vm106_vm0, %v92_v10  ;;  %421 = vmatprep.mubr.msk.f32.mxu1 %vm106_vm0, %v100_v11  ;;  %v31_v10 = vadd.s32 96, %v545_v23  ;;  %v357_v22 = vsel %vm48_vm12, 1.0, %v443_v27 }
   0xf   :  { %vm49_vm13 = vcmp.eq.s32.totalorder %v31_v10, %v548_v25 }
  0x10   :  { %410 = vmatmul.mubr.msk.f32.gmra.mrb[2].mxu0 %vm106_vm0, %v93_v12  ;;  %422 = vmatmul.mubr.msk.f32.gmra.mrb[2].mxu1 %vm106_vm0, %v101_v13  ;;  %v358_v24 = vsel %vm49_vm13, 1.0, %v443_v27 }
  0x11   :  { %412 = vmatprep.mubr.msk.f32.mxu0 %vm106_vm0, %v94_v14  ;;  %424 = vmatprep.mubr.msk.f32.mxu1 %vm106_vm0, %v102_v15  ;;  %v355_v14 = vsel %vm46_vm10, 1.0, %v443_v27  ;;  %v356_v15 = vsel %vm47_vm11, 1.0, %v443_v27 }
  0x14   :  { %413 = vmatmul.mubr.msk.f32.gmra.mrb[4].mxu0 %vm106_vm0, %v95_v16  ;;  %425 = vmatmul.mubr.msk.f32.gmra.mrb[4].mxu1 %vm106_vm0, %v103_v17  ;;  %v32_v17 = vadd.s32 104, %v545_v23 }
  0x15   :  { %415 = vmatprep.mubr.msk.f32.mxu0 %vm106_vm0, %v96_v18  ;;  %427 = vmatprep.mubr.msk.f32.mxu1 %vm106_vm0, %v104_v19  ;;  %v33_v18 = vadd.s32 112, %v545_v23 }
  0x16   :  { %vm50_vm14 = vcmp.eq.s32.totalorder %v32_v17, %v548_v25 }
  0x17   :  { %vm51_vm15 = vcmp.eq.s32.totalorder %v33_v18, %v548_v25  ;;  %v359_v32 = vsel %vm50_vm14, 1.0, %v443_v27 }
  0x18   :  { %416 = vmatmul.mubr.msk.f32.gmra.mrb[6].mxu0 %vm106_vm0, %v97_v20  ;;  %428 = vmatmul.mubr.msk.f32.gmra.mrb[6].mxu1 %vm106_vm0, %v105_v21 }
  0xdf   :  { %v408_v31 = vpop.f32.mrb[0].mxu0  ;;  %v420_v33 = vpop.f32.mrb[0].mxu1 }
  0xe0   :  { %v301_v34 = vmul.f32 %v408_v31, %v347_v28  ;;  %v221_v35 = vpop.f32.mrb[1].mxu0  ;;  %v261_v36 = vpop.f32.mrb[1].mxu1  ;;  %v309_v19 = vmul.f32 %v420_v33, %v355_v14  ;;  %v34_v28 = vadd.s32 120, %v545_v23  ;;  %v360_v33 = vsel %vm51_vm15, 1.0, %v443_v27 }
  0xe1   :  { %v300_v37 = vmul.f32 %v346_v30, %v221_v35  ;;  %v308_v13 = vmul.f32 %v354_v5, %v261_v36 }
  0xe2   :  { %vm52_vm0 = vcmp.eq.s32.totalorder %v34_v28, %v548_v25  ;;  %v339_v25 = vld [vmem:[%s609_s3] sm:$0x1] }
  0xe3   :  { %v316_v40 = vadd.f32 %v301_v34, %v300_v37  ;;  %v411_v41 = vpop.f32.mrb[2].mxu0  ;;  %v423_v43 = vpop.f32.mrb[2].mxu1  ;;  %v361_v38 = vsel %vm52_vm0, 1.0, %v443_v27 }
  0xe4   :  { %v231_v45 = vpop.f32.mrb[3].mxu0  ;;  %v271_v47 = vpop.f32.mrb[3].mxu1  ;;  %v303_v51 = vmul.f32 %v411_v41, %v349_v44  ;;  %v311_v29 = vmul.f32 %v423_v43, %v357_v22 }
  0xe5   :  { %v302_v48 = vmul.f32 %v348_v39, %v231_v45  ;;  %v310_v21 = vmul.f32 %v356_v15, %v271_v47  ;;  %v337_v47 = vstv %s608_s2 }
  0xe7   :  { %v317_v52 = vadd.f32 %v316_v40, %v302_v48  ;;  %v414_v53 = vpop.f32.mrb[4].mxu0  ;;  %v426_v54 = vpop.f32.mrb[4].mxu1 }
  0xe8   :  { %v241_v56 = vpop.f32.mrb[5].mxu0  ;;  %v281_v58 = vpop.f32.mrb[5].mxu1  ;;  %v305_v63 = vmul.f32 %v414_v53, %v351_v55  ;;  %v313_v35 = vmul.f32 %v426_v54, %v359_v32 }
  0xe9   :  { %v304_v59 = vmul.f32 %v350_v50, %v241_v56  ;;  %v318_v60 = vadd.f32 %v317_v52, %v303_v51  ;;  %v312_v31 = vmul.f32 %v358_v24, %v281_v58 }
  0xeb   :  { %v319_v0 = vadd.f32 %v318_v60, %v304_v59  ;;  %v417_v1 = vpop.f32.mrb[6].mxu0  ;;  %v429_v2 = vpop.f32.mrb[6].mxu1 }
  0xec   :  { %v251_v4 = vpop.f32.mrb[7].mxu0  ;;  %v291_v7 = vpop.f32.mrb[7].mxu1  ;;  %v307_v11 = vmul.f32 %v417_v1, %v353_v3  ;;  %v315_v40 = vmul.f32 %v429_v2, %v361_v38 }
  0xed   :  { %v306_v8 = vmul.f32 %v352_v62, %v251_v4  ;;  %v320_v9 = vadd.f32 %v319_v0, %v305_v63  ;;  %v314_v37 = vmul.f32 %v360_v33, %v291_v7 }
  0xef   :  { %v321_v12 = vadd.f32 %v320_v9, %v306_v8 }
  0xf1   :  { %v322_v16 = vadd.f32 %v321_v12, %v307_v11 }
  0xf3   :  { %v323_v20 = vadd.f32 %v322_v16, %v308_v13 }
  0xf5   :  { %v324_v26 = vadd.f32 %v323_v20, %v309_v19 }
  0xf7   :  { %v325_v30 = vadd.f32 %v324_v26, %v310_v21 }
  0xf9   :  { %v326_v34 = vadd.f32 %v325_v30, %v311_v29 }
  0xfb   :  { %v327_v36 = vadd.f32 %v326_v34, %v312_v31 }
  0xfd   :  { %v328_v39 = vadd.f32 %v327_v36, %v313_v35 }
  0xff   :  { %v329_v23 = vadd.f32 %v328_v39, %v314_v37 }
 0x101   :  { %v330_v41 = vadd.f32 %v329_v23, %v315_v40 }
 0x103   :  { %v331_v42 = vrot.slane %v330_v41, 4 }
 0x105   :  { %v332_v43 = vadd.f32 %v331_v42, %v330_v41 }
 0x107   :  { %v333_v44 = vrot.slane %v332_v43, 2 }
 0x109   :  { %v334_v45 = vadd.f32 %v333_v44, %v332_v43 }
 0x10b   :  { %v335_v46 = vrot.slane %v334_v45, 1 }
 0x10d   :  { %v336_v48 = vadd.f32 %v335_v46, %v334_v45 }
 0x10f   :  { %v338_v49 = vadd.f32 %v337_v47, %v336_v48 }
 0x111   :  { %v340_v27 = vmul.f32 %v339_v25, %v338_v49 }
 0x113   :  { %341 = vst [vmem:[%s610_s4] sm:$0x1] %v340_v27 }

</bundles_post_ra>
